<compile_context>
chip_gen: v7x
topology: tpu7x:2x2x1
jax: 0.10.0
libtpu: 0.0.40
codegen_flags: <defaults>
</compile_context>

<pallas_src>
import functools

import jax
import jax.numpy as jnp
import numpy as np
from jax.experimental import pallas as pl
from jax.experimental.pallas import tpu as pltpu


_TABLE_CACHE = {}


def _round_up(v, m):
    return ((v + m - 1) // m) * m


def _vmem_budget():
    """(vmem_limit_bytes, min_grid_steps) derived from the local chip generation."""
    try:
        cap = int(pltpu.get_tpu_info().vmem_capacity_bytes)
    except Exception:
        cap = 64 * 1024 * 1024                     # conservative (v7x-sized) default
    # Leave headroom for Mosaic internal scratch / semaphores / double-buffered I/O.
    limit = min(cap * 3 // 4, 100 * 1024 * 1024)   # ~48 MiB on v7x, ~96 MiB on v5e/v6e
    # 64-MiB chips (v7x) have 2 TensorCores: keep >=4 grid steps so the "parallel"
    # batch axis can shard across both cores and still double-buffer; 1-TC chips
    # only need >=2 steps for prefetch/writeback overlap.
    min_steps = 4 if cap <= 80 * 1024 * 1024 else 2
    return limit, min_steps


def _dft_tables(n, n_pad, d, d_pad, compute_dtype):
    """Zero-padded DFT tables: stacked [C_N; S_N] (2*n_pad, n_pad), C_D, S_D (d_pad, d_pad).

    Tables are generated in f32 on the host and deliberately downcast to the
    compute dtype (bf16 for the fast path). Zero padding keeps the padded rows /
    columns of x from contributing, so the top-left (N, D) result block is exact.
    """
    key = (n, n_pad, d, d_pad, jnp.dtype(compute_dtype).name)
    if key in _TABLE_CACHE:
        return _TABLE_CACHE[key]

    def cos_sin(m):
        idx = np.arange(m)
        ang = 2.0 * np.pi * np.outer(idx, idx) / m
        return np.cos(ang).astype(np.float32), np.sin(ang).astype(np.float32)

    cn, sn = cos_sin(n)
    cdm, sdm = cos_sin(d)

    csn = np.zeros((2 * n_pad, n_pad), np.float32)
    csn[:n, :n] = cn
    csn[n_pad:n_pad + n, :n] = sn
    cdp = np.zeros((d_pad, d_pad), np.float32)
    cdp[:d, :d] = cdm
    sdp = np.zeros((d_pad, d_pad), np.float32)
    sdp[:d, :d] = sdm

    tables = tuple(jnp.asarray(t, dtype=compute_dtype) for t in (csn, cdp, sdp))
    _TABLE_CACHE[key] = tables
    return tables


def _pick_bt(batch, n_pad, d_pad, x_itemsize, table_bytes, budget, max_bt):
    """Largest batch block (<= max_bt, divides batch) whose footprint fits the budget."""
    for bt in range(min(batch, max_bt), 0, -1):
        if batch % bt:
            continue
        io_blocks = 2 * 2 * bt * n_pad * d_pad * x_itemsize  # x + out, double-buffered
        temps = 4 * n_pad * d_pad * 4                        # per-row f32 t/y + cast slack
        # Constant-index tables only DMA once, but count them double-buffered so the
        # estimate is safe regardless of the pipeline's buffer assignment.
        if io_blocks + temps + 2 * table_bytes <= budget:
            return bt
    return 1


def fnet_kernel(x_ref, csn_ref, cd_ref, sd_ref, o_ref):
    """One grid step: real 2-D DFT of a (Bt, N, D) batch block, row-at-a-time.

    x block : (Bt, N, D)  input dtype
    csn     : (2N, N)     stacked [C_N; S_N] table (compute dtype)
    cd, sd  : (D, D)      C_D / S_D tables         (compute dtype)
    out     : (Bt, N, D)  Re(FFT2(x)) in the input dtype
    """
    bt, n, d = x_ref.shape
    cdt = csn_ref.dtype

    csn = csn_ref[...]
    cd = cd_ref[...]
    sd = sd_ref[...]

    # Static unroll over the (small) batch block: each row is fully finished and
    # stored before the next starts, so its f32 temporaries die immediately —
    # no concatenation, no block-wide f32 intermediates.
    for b in range(bt):
        xb = x_ref[b].astype(cdt)                                       # (N, D)
        # N-side: one fused (2N, N) @ (N, D) matmul; x[b] is the shared MXU RHS
        # for both the cos and sin halves. f32 accumulation.
        t = jnp.dot(csn, xb, preferred_element_type=jnp.float32)        # (2N, D) f32
        # D-side: static sublane slices (n is a multiple of 128) feed C_D / S_D.
        y = jnp.dot(t[:n].astype(cdt), cd, preferred_element_type=jnp.float32)
        y = y - jnp.dot(t[n:].astype(cdt), sd, preferred_element_type=jnp.float32)
        o_ref[b] = y.astype(o_ref.dtype)


def fnet_block(x, *, compute_dtype=jnp.bfloat16):
    """Pallas implementation of FNetBlock.forward for real x of shape (B, N, D).

    Jit-friendly: no device sync inside; wrap in jax.jit together with the rest of
    the FNet layer so XLA can overlap it with the surrounding LayerNorm / FFN.
    """
    B, N, D = x.shape
    n_pad = _round_up(N, 128)    # MXU contraction K / lane dim of the stacked table
    d_pad = _round_up(D, 128)    # lane multiple -> lane-dense (unmasked) stores
    needs_pad = (n_pad, d_pad) != (N, D)

    csn, cd, sd = _dft_tables(N, n_pad, D, d_pad, compute_dtype)
    table_bytes = int((csn.size + cd.size + sd.size) * csn.dtype.itemsize)

    x_p = jnp.pad(x, ((0, 0), (0, n_pad - N), (0, d_pad - D))) if needs_pad else x

    vmem_limit, min_steps = _vmem_budget()
    max_bt = max(1, min(8, B // min_steps))
    bt = _pick_bt(B, n_pad, d_pad, x_p.dtype.itemsize, table_bytes,
                  budget=int(0.75 * vmem_limit), max_bt=max_bt)

    flops = 4 * B * n_pad * d_pad * (n_pad + d_pad)
    bytes_accessed = 2 * x_p.size * x_p.dtype.itemsize + table_bytes

    fn = pl.pallas_call(
        fnet_kernel,
        out_shape=jax.ShapeDtypeStruct((B, n_pad, d_pad), x.dtype),
        grid_spec=pltpu.PrefetchScalarGridSpec(
            num_scalar_prefetch=0,
            grid=(B // bt,),
            in_specs=[
                pl.BlockSpec((bt, n_pad, d_pad), lambda i: (i, 0, 0)),   # x batch block
                pl.BlockSpec((2 * n_pad, n_pad), lambda i: (0, 0)),      # [C_N; S_N]
                pl.BlockSpec((d_pad, d_pad), lambda i: (0, 0)),          # C_D
                pl.BlockSpec((d_pad, d_pad), lambda i: (0, 0)),          # S_D
            ],
            out_specs=pl.BlockSpec((bt, n_pad, d_pad), lambda i: (i, 0, 0)),
        ),
        compiler_params=pltpu.CompilerParams(
            dimension_semantics=("parallel",),    # batch axis -> both v7x TensorCores
            vmem_limit_bytes=int(vmem_limit),
        ),
        cost_estimate=pl.CostEstimate(
            flops=int(flops), transcendentals=0, bytes_accessed=int(bytes_accessed)),
    )
    out_p = fn(x_p, csn, cd, sd)

    # TODO(synk): in a stacked FNet keep activations (128,128)-padded across layers
    #             and fold this slice into the consumer (avoids an HBM round trip).
    return out_p[:, :N, :D] if needs_pad else out_p


if __name__ == "__main__":
    # Small shape consistent with FNet usage: (batch, seq, hidden).
    B, N, D = 2, 8, 32
    key = jax.random.PRNGKey(0)
    x = jax.random.normal(key, (B, N, D), dtype=jnp.float32)

    # Reference: real part of the 2-D FFT over the last two axes (same as PyTorch).
    ref = np.asarray(jnp.real(jnp.fft.fft(jnp.fft.fft(x, axis=-1), axis=-2)))

    # 1) f32 compute path: tight tolerance (validates the DFT-as-matmul math).
    f32_fn = jax.jit(functools.partial(fnet_block, compute_dtype=jnp.float32))
    out_f32 = jax.block_until_ready(f32_fn(x))
    np.testing.assert_allclose(np.asarray(out_f32), ref, rtol=1e-3, atol=1e-3)

    # 2) bf16 MXU fast path (f32 accumulation): looser tolerance for bf16 operands.
    bf16_fn = jax.jit(functools.partial(fnet_block, compute_dtype=jnp.bfloat16))
    out_bf16 = jax.block_until_ready(bf16_fn(x))
    np.testing.assert_allclose(np.asarray(out_bf16), ref, rtol=2.5e-2, atol=2.5e-1)

    print("KERNEL_OK")
</pallas_src>

<mosaic_0001>
module attributes {stable_mosaic.version = 11 : i64} {
  func.func @fnet_kernel(%arg0: i32, %arg1: memref<1x128x128xf32, #tpu.memory_space<vmem>>, %arg2: memref<256x128xf32, #tpu.memory_space<vmem>>, %arg3: memref<128x128xf32, #tpu.memory_space<vmem>>, %arg4: memref<128x128xf32, #tpu.memory_space<vmem>>, %arg5: memref<1x128x128xf32, #tpu.memory_space<vmem>>) attributes {dimension_semantics = [#tpu.dimension_semantics<parallel>], iteration_bounds = array<i64: 2>, scalar_prefetch = 0 : i64, scratch_operands = 0 : i64, tpu.core_type = #tpu.core_type<tc>, window_params = [{transform_indices = @transform_0, window_bounds = array<i64: 1, 128, 128>}, {pipeline_mode = #tpu.pipeline_mode<synchronous>, transform_indices = @transform_1, window_bounds = array<i64: 256, 128>}, {pipeline_mode = #tpu.pipeline_mode<synchronous>, transform_indices = @transform_2, window_bounds = array<i64: 128, 128>}, {pipeline_mode = #tpu.pipeline_mode<synchronous>, transform_indices = @transform_3, window_bounds = array<i64: 128, 128>}, {transform_indices = @transform_4, window_bounds = array<i64: 1, 128, 128>}]} {
    %c0 = arith.constant 0 : index
    %c0_0 = arith.constant 0 : index
    %0 = vector.load %arg2[%c0, %c0_0] : memref<256x128xf32, #tpu.memory_space<vmem>>, vector<256x128xf32>
    %c0_1 = arith.constant 0 : index
    %c0_2 = arith.constant 0 : index
    %1 = vector.load %arg3[%c0_1, %c0_2] : memref<128x128xf32, #tpu.memory_space<vmem>>, vector<128x128xf32>
    %c0_3 = arith.constant 0 : index
    %c0_4 = arith.constant 0 : index
    %2 = vector.load %arg4[%c0_3, %c0_4] : memref<128x128xf32, #tpu.memory_space<vmem>>, vector<128x128xf32>
    %c0_5 = arith.constant 0 : index
    %c0_6 = arith.constant 0 : index
    %c0_7 = arith.constant 0 : index
    %3 = vector.load %arg1[%c0_5, %c0_6, %c0_7] : memref<1x128x128xf32, #tpu.memory_space<vmem>>, vector<1x128x128xf32>
    %4 = vector.shape_cast %3 : vector<1x128x128xf32> to vector<128x128xf32>
    %cst = arith.constant dense<0.000000e+00> : vector<256x128xf32>
    %5 = tpu.matmul %0, %4, %cst {dimension_numbers = #tpu.dot_dimension_numbers<[1], [0], [0], [1], [0, 0, 1, 1], [], []>} : vector<256x128xf32>, vector<128x128xf32>, vector<256x128xf32> -> vector<256x128xf32>
    %6 = vector.extract_strided_slice %5 {offsets = [0, 0], sizes = [128, 128], strides = [1, 1]} : vector<256x128xf32> to vector<128x128xf32>
    %cst_8 = arith.constant dense<0.000000e+00> : vector<128x128xf32>
    %7 = tpu.matmul %6, %1, %cst_8 {dimension_numbers = #tpu.dot_dimension_numbers<[1], [0], [0], [1], [0, 0, 1, 1], [], []>} : vector<128x128xf32>, vector<128x128xf32>, vector<128x128xf32> -> vector<128x128xf32>
    %8 = vector.extract_strided_slice %5 {offsets = [128, 0], sizes = [128, 128], strides = [1, 1]} : vector<256x128xf32> to vector<128x128xf32>
    %cst_9 = arith.constant dense<0.000000e+00> : vector<128x128xf32>
    %9 = tpu.matmul %8, %2, %cst_9 {dimension_numbers = #tpu.dot_dimension_numbers<[1], [0], [0], [1], [0, 0, 1, 1], [], []>} : vector<128x128xf32>, vector<128x128xf32>, vector<128x128xf32> -> vector<128x128xf32>
    %10 = arith.subf %7, %9 : vector<128x128xf32>
    %c0_10 = arith.constant 0 : index
    %c0_11 = arith.constant 0 : index
    %c0_12 = arith.constant 0 : index
    %11 = vector.load %arg5[%c0_10, %c0_11, %c0_12] : memref<1x128x128xf32, #tpu.memory_space<vmem>>, vector<1x128x128xf32>
    %12 = vector.shape_cast %11 : vector<1x128x128xf32> to vector<128x128xf32>
    %13 = vector.shape_cast %10 : vector<128x128xf32> to vector<1x128x128xf32>
    tpu.vector_store %arg5[%c0_10, %c0_11, %c0_12], %13 {strides = array<i32>} : memref<1x128x128xf32, #tpu.memory_space<vmem>>, vector<1x128x128xf32>,
    return
  }
  func.func @transform_0(%arg0: i32) -> (i32, i32, i32) {
    %c0_i32 = arith.constant 0 : i32
    %c0_i32_0 = arith.constant 0 : i32
    %c0_i32_1 = arith.constant 0 : i32
    return %arg0, %c0_i32, %c0_i32_0 : i32, i32, i32
  }
  func.func @transform_1(%arg0: i32) -> (i32, i32) {
    %c0_i32 = arith.constant 0 : i32
    %c0_i32_0 = arith.constant 0 : i32
    %c0_i32_1 = arith.constant 0 : i32
    return %c0_i32, %c0_i32_0 : i32, i32
  }
  func.func @transform_2(%arg0: i32) -> (i32, i32) {
    %c0_i32 = arith.constant 0 : i32
    %c0_i32_0 = arith.constant 0 : i32
    %c0_i32_1 = arith.constant 0 : i32
    return %c0_i32, %c0_i32_0 : i32, i32
  }
  func.func @transform_3(%arg0: i32) -> (i32, i32) {
    %c0_i32 = arith.constant 0 : i32
    %c0_i32_0 = arith.constant 0 : i32
    %c0_i32_1 = arith.constant 0 : i32
    return %c0_i32, %c0_i32_0 : i32, i32
  }
  func.func @transform_4(%arg0: i32) -> (i32, i32, i32) {
    %c0_i32 = arith.constant 0 : i32
    %c0_i32_0 = arith.constant 0 : i32
    %c0_i32_1 = arith.constant 0 : i32
    return %arg0, %c0_i32, %c0_i32_0 : i32, i32, i32
  }
}

</mosaic_0001>

<bundles_post_ra>
// kernel: fnet_block.1
= control target key start
LH: loop header
LB: loop body
LE: loop exit
PB: predicated region body
PF: predicated region fallthrough
CT: control target
= control target key end

     0   :  { %9 = vsyncpa [#allocation3], 0  ;;  %s1713_s0 = inlined_call_operand.vmem [shape: f32[2,128,128], index: 0, kind: input, shape index: {}]   ;;  %s1714_s1 = inlined_call_operand.vmem [shape: f32[256,128], index: 1, kind: input, shape index: {}]   ;;  %s1715_s2 = inlined_call_operand.hbm [shape: f32[128,128], index: 2, kind: input, shape index: {}]   ;;  %s1716_s3 = inlined_call_operand.hbm [shape: f32[128,128], index: 3, kind: input, shape index: {}]   ;;  %s1717_s4 = inlined_call_operand.vmem [shape: f32[2,128,128], index: 4, kind: output, shape index: {}]  }
   0x1   :  { %10 = vsyncpa [#allocation5], 0  ;;  %s1481_s15 = smov 0  }
   0x2 LB: > { %s1487_s16 = sadd.s32 4294967295, %s1450_s15   ;;  %p934_p0 = scmp.ge.s32.totalorder %s1450_s15, 1  ;;  %s1450_s15 = sphi %s1481_s15, %s16_s15  }
   0x3   : > { %p136_p1 = scmp.lt.s32.totalorder %s1450_s15, 3  ;;  %s1452_s17 = smov [#allocation2]  }
   0x4   : > { %s151_s18 = sshll.u32 %s1452_s17, 4  ;;  %p1718_p3 = scmp.eq.s32.totalorder %s1487_s16, 0  ;;  %s152_s18 = int_to_ptr.vmem [resolvable:$true] %s151_s18 }
   0x5   : > { %p1491_p2 = pnand %p934_p0, %p136_p1  ;;  %s1453_s20 = smov [#allocation4]  }
   0x6   : > { %s164_s21 = sshll.u32 %s1453_s20, 4  ;;  %s1380_s25 = scalar_lea.hbm %s1715_s2, 2048  ;;  %s1504_s21 = int_to_ptr.vmem [resolvable:$true] %s164_s21 }
   0x7   : > { %s1720_s19 = scalar_select %p1491_p2, 1, 0 }
   0x8   : > { %p1357_p4 = pneg %p1491_p2  ;;  %p1381_p6 = scmp.ne.s32.totalorder %s1715_s2, %s1380_s25 }
   0x9   : > { %p1387_p10 = scmp.lt.u32.totalorder %s1380_s25, %s1715_s2 }
   0xa   : > { %p1500_p5 = pnand %p1718_p3, %p1357_p4 }
   0xc   : > { %p1382_p7 = pneg %p1500_p5 }
   0xe   : > { %p1383_p8 = pnand %p1382_p7, %p1381_p6 }
  0x10   : > { %p1384_p9 = pneg %p1383_p8 }
  0x12   : > { %p1389_p11 = pnand %p1387_p10, %p1384_p9 }
  0x14   : > { %1392 = shalt.err (!%p1389_p11)
}
  0x15   : > { %s1393_s30 = scalar_lea.vmem %s152_s18, 2048  ;;  %p1401_p1 = scmp.lt.s32.totalorder %s152_s18, %s152_s18 }
  0x16   : > { %p1394_p12 = scmp.ne.s32.totalorder %s152_s18, %s1393_s30  ;;  %p1402_p4 = scmp.lt.s32.totalorder %s1393_s30, %s1393_s30 }
  0x18   : > { %p1396_p13 = pnand %p1394_p12, %p1382_p7  ;;  %p1403_p3 = por %p1402_p4, %p1401_p1 }
  0x1a   : > { %p1397_p0 = pneg %p1396_p13 }
  0x1c   : > { %p1404_p2 = pnand %p1403_p3, %p1397_p0 }
  0x1e   : > { %1407 = shalt.err (!%p1404_p2)
}
  0x1f   : > { %s1454_s5 = smov 128   ;;  %s1455_s6 = smov 8  }
  0x20   : > { %1360 = dma.hbm_to_vmem [thread:$0]  (!%p1500_p5), %s1715_s2, 2048, %s152_s18, [#allocation3], %s1454_s5, %s1454_s5, %s1455_s6  }
  0x21   : > { %s1408_s11 = scalar_lea.hbm %s1716_s3, 2048 }
  0x22   : > { %p1409_p6 = scmp.ne.s32.totalorder %s1716_s3, %s1408_s11  ;;  %p1415_p8 = scmp.lt.u32.totalorder %s1408_s11, %s1716_s3 }
  0x24   : > { %p1411_p2 = pnand %p1409_p6, %p1382_p7 }
  0x26   : > { %p1412_p3 = pneg %p1411_p2 }
  0x28   : > { %p1417_p9 = pnand %p1415_p8, %p1412_p3 }
  0x2a   : > { %1420 = shalt.err (!%p1417_p9)
}
  0x2b   : > { %s1421_s18 = scalar_lea.vmem %s1504_s21, 2048  ;;  %p1429_p13 = scmp.lt.s32.totalorder %s1504_s21, %s1504_s21 }
  0x2c   : > { %p1422_p10 = scmp.ne.s32.totalorder %s1504_s21, %s1421_s18  ;;  %p1430_p0 = scmp.lt.s32.totalorder %s1421_s18, %s1421_s18 }
  0x2e   : > { %p1424_p11 = pnand %p1422_p10, %p1382_p7  ;;  %p1431_p1 = por %p1430_p0, %p1429_p13 }
  0x30   : > { %p1425_p12 = pneg %p1424_p11 }
  0x32   : > { %p1432_p4 = pnand %p1431_p1, %p1425_p12 }
  0x34   : > { %1435 = shalt.err (!%p1432_p4)
}
  0x35   : > { %1363 = dma.hbm_to_vmem [thread:$0]  (!%p1500_p5), %s1716_s3, 2048, %s1504_s21, [#allocation5], %s1454_s5, %s1454_s5, %s1455_s6  }
  0x36   : > { %p1722_p6 = scmp.ne.s32.totalorder %s1720_s19, 0 }
  0x37   : > { %p1723_p2 = scmp.eq.s32.totalorder (!%p1722_p6), %s1487_s16, 0 }
  0x38   : > { %188 = sbr.rel (%p1722_p6) target bundleno = 597 (0x255), region = 36 }
  0x3f   : > { %1441 = dma.done.wait (%p1723_p2), [#allocation3], 2048   ;;  %p1724_p7 = pmov %p1723_p2 }
  0x40   : > { %p1725_p3 = pmov %p1723_p2 }
  0x41   : > { %1443 = vsyncadd (%p1724_p7), [#allocation3], 4294965248 }
  0x42   : > { %1445 = dma.done.wait (%p1725_p3), [#allocation5], 2048   ;;  %p1726_p8 = pmov %p1723_p2 }
  0x43   : > { %p218_p9 = scmp.lt.s32.totalorder %s1487_s16, 1  ;;  %v228_v9 = vld [vmem:[%s1714_s1] sm:$0xff]  ;;  %v261_v19 = vld [vmem:[#allocation2 + $0x8] sm:$0xff]  ;;  %v262_v20 = vld [vmem:[#allocation2 + $0x10] sm:$0xff] }
  0x44   : > { %1447 = vsyncadd (%p1726_p8), [#allocation5], 4294965248  ;;  %1093 = vmatprep.mubr.f32.mxu0 %v228_v9  ;;  %v260_v18 = vld [vmem:[#allocation2] sm:$0xff]  ;;  %v263_v24 = vld [vmem:[#allocation2 + $0x18] sm:$0xff] }
  0x45   : > { %s1728_s16 = smov (!%p218_p9, %s1487_s16), 1  ;;  %v1285_v23 = vpack.c.bf16 %v261_v19, %v260_v18  ;;  %v1289_v26 = vpack.c.bf16 %v263_v24, %v262_v20  ;;  %v264_v27 = vld [vmem:[#allocation2 + $0x20] sm:$0xff]  ;;  %v265_v28 = vld [vmem:[#allocation2 + $0x28] sm:$0xff]  ;;  %v266_v33 = vld [vmem:[#allocation2 + $0x30] sm:$0xff] }
  0x46   : > { %s947_s19 = sshll.u32 %s1728_s16, 7  ;;  %v1293_v31 = vpack.c.bf16 %v265_v28, %v264_v27  ;;  %v267_v34 = vld [vmem:[#allocation2 + $0x38] sm:$0xff]  ;;  %v268_v37 = vld [vmem:[#allocation2 + $0x40] sm:$0xff]  ;;  %v269_v38 = vld [vmem:[#allocation2 + $0x48] sm:$0xff] }
  0x47   : > { %s1573_s24 = scalar_lea.vmem %s1713_s0, %s947_s19  ;;  %1286 = vmatprep.subr.bf16.mxu1 %v1285_v23  ;;  %v1297_v36 = vpack.c.bf16 %v267_v34, %v266_v33  ;;  %v1301_v39 = vpack.c.bf16 %v269_v38, %v268_v37  ;;  %v270_v40 = vld [vmem:[#allocation2 + $0x50] sm:$0xff]  ;;  %v271_v41 = vld [vmem:[#allocation2 + $0x58] sm:$0xff]  ;;  %v229_v42 = vld [vmem:[%s1714_s1 + $0x8] sm:$0xff]  ;;  %s1692_s21 = scalar_lea.vmem %s1717_s4, %s947_s19 }
  0x48   : > { %v292_v0 = vld [vmem:[%s1573_s24] sm:$0xff]  ;;  %v293_v1 = vld [vmem:[%s1573_s24 + $0x8] sm:$0xff]  ;;  %v294_v2 = vld [vmem:[%s1573_s24 + $0x10] sm:$0xff]  ;;  %1288 = vmatpush3.bf16.msra.mxu1 %v1285_v23  ;;  %v1305_v44 = vpack.c.bf16 %v271_v41, %v270_v40 }
  0x49   : > { %v1253_v3 = vpack.c.bf16 %v293_v1, %v292_v0  ;;  %v295_v4 = vld [vmem:[%s1573_s24 + $0x18] sm:$0xff]  ;;  %v296_v6 = vld [vmem:[%s1573_s24 + $0x20] sm:$0xff]  ;;  %v297_v7 = vld [vmem:[%s1573_s24 + $0x28] sm:$0xff]  ;;  %1290 = vmatprep.subr.bf16.mxu1 %v1289_v26 }
  0x4a   : > { %v1257_v5 = vpack.c.bf16 %v295_v4, %v294_v2  ;;  %v1261_v8 = vpack.c.bf16 %v297_v7, %v296_v6  ;;  %v298_v10 = vld [vmem:[%s1573_s24 + $0x30] sm:$0xff]  ;;  %v299_v11 = vld [vmem:[%s1573_s24 + $0x38] sm:$0xff]  ;;  %v300_v13 = vld [vmem:[%s1573_s24 + $0x40] sm:$0xff] }
  0x4b   : > { %1254 = vmatprep.subr.bf16.mxu0 %v1253_v3  ;;  %v1265_v12 = vpack.c.bf16 %v299_v11, %v298_v10  ;;  %v301_v14 = vld [vmem:[%s1573_s24 + $0x48] sm:$0xff]  ;;  %v302_v16 = vld [vmem:[%s1573_s24 + $0x50] sm:$0xff]  ;;  %v303_v17 = vld [vmem:[%s1573_s24 + $0x58] sm:$0xff] }
  0x4c   : > { %1256 = vmatpush3.bf16.msra.mxu0 %v1253_v3  ;;  %v1269_v15 = vpack.c.bf16 %v301_v14, %v300_v13  ;;  %v1273_v21 = vpack.c.bf16 %v303_v17, %v302_v16  ;;  %v304_v22 = vld [vmem:[%s1573_s24 + $0x60] sm:$0xff]  ;;  %v305_v25 = vld [vmem:[%s1573_s24 + $0x68] sm:$0xff]  ;;  %v306_v30 = vld [vmem:[%s1573_s24 + $0x70] sm:$0xff]  ;;  %1292 = vmatpush3.bf16.msra.mxu1 %v1289_v26 }
  0x4d   : > { %1258 = vmatprep.subr.bf16.mxu0 %v1257_v5  ;;  %v1277_v29 = vpack.c.bf16 %v305_v25, %v304_v22  ;;  %v307_v32 = vld [vmem:[%s1573_s24 + $0x78] sm:$0xff]  ;;  %1294 = vmatprep.subr.bf16.mxu1 %v1293_v31  ;;  %v230_v43 = vld [vmem:[%s1714_s1 + $0x10] sm:$0xff]  ;;  %v272_v45 = vld [vmem:[#allocation2 + $0x60] sm:$0xff] }
  0x4e   : > { %v1281_v35 = vpack.c.bf16 %v307_v32, %v306_v30  ;;  %v273_v46 = vld [vmem:[#allocation2 + $0x68] sm:$0xff]  ;;  %v231_v47 = vld [vmem:[%s1714_s1 + $0x18] sm:$0xff]  ;;  %v232_v48 = vld [vmem:[%s1714_s1 + $0x20] sm:$0xff] }
  0x4f   : > { %v1309_v49 = vpack.c.bf16 %v273_v46, %v272_v45  ;;  %v274_v50 = vld [vmem:[#allocation2 + $0x70] sm:$0xff]  ;;  %v275_v51 = vld [vmem:[#allocation2 + $0x78] sm:$0xff]  ;;  %v233_v52 = vld [vmem:[%s1714_s1 + $0x28] sm:$0xff] }
  0x50   : > { %1260 = vmatpush3.bf16.msra.mxu0 %v1257_v5  ;;  %1296 = vmatpush3.bf16.msra.mxu1 %v1293_v31  ;;  %v234_v53 = vld [vmem:[%s1714_s1 + $0x30] sm:$0xff]  ;;  %v1313_v54 = vpack.c.bf16 %v275_v51, %v274_v50  ;;  %v235_v55 = vld [vmem:[%s1714_s1 + $0x38] sm:$0xff]  ;;  %v236_v56 = vld [vmem:[%s1714_s1 + $0x40] sm:$0xff] }
  0x51   : > { %1262 = vmatprep.subr.bf16.mxu0 %v1261_v8  ;;  %1298 = vmatprep.subr.bf16.mxu1 %v1297_v36  ;;  %v237_v57 = vld [vmem:[%s1714_s1 + $0x48] sm:$0xff]  ;;  %v238_v58 = vld [vmem:[%s1714_s1 + $0x50] sm:$0xff]  ;;  %v239_v59 = vld [vmem:[%s1714_s1 + $0x58] sm:$0xff] }
  0x52   : > { %v240_v60 = vld [vmem:[%s1714_s1 + $0x60] sm:$0xff]  ;;  %v241_v61 = vld [vmem:[%s1714_s1 + $0x68] sm:$0xff]  ;;  %v242_v62 = vld [vmem:[%s1714_s1 + $0x70] sm:$0xff] }
  0x53   : > { %v243_v63 = vld [vmem:[%s1714_s1 + $0x78] sm:$0xff]  ;;  %v244_v0 = vld [vmem:[%s1714_s1 + $0x80] sm:$0xff]  ;;  %v245_v1 = vld [vmem:[%s1714_s1 + $0x88] sm:$0xff] }
  0x54   : > { %1264 = vmatpush3.bf16.msra.mxu0 %v1261_v8  ;;  %1300 = vmatpush3.bf16.msra.mxu1 %v1297_v36  ;;  %v246_v2 = vld [vmem:[%s1714_s1 + $0x90] sm:$0xff]  ;;  %v247_v3 = vld [vmem:[%s1714_s1 + $0x98] sm:$0xff]  ;;  %v248_v4 = vld [vmem:[%s1714_s1 + $0xa0] sm:$0xff] }
  0x55   : > { %1266 = vmatprep.subr.bf16.mxu0 %v1265_v12  ;;  %1302 = vmatprep.subr.bf16.mxu1 %v1301_v39  ;;  %v249_v5 = vld [vmem:[%s1714_s1 + $0xa8] sm:$0xff]  ;;  %v250_v6 = vld [vmem:[%s1714_s1 + $0xb0] sm:$0xff]  ;;  %v251_v7 = vld [vmem:[%s1714_s1 + $0xb8] sm:$0xff] }
  0x56   : > { %v252_v8 = vld [vmem:[%s1714_s1 + $0xc0] sm:$0xff]  ;;  %v253_v9 = vld [vmem:[%s1714_s1 + $0xc8] sm:$0xff]  ;;  %v254_v10 = vld [vmem:[%s1714_s1 + $0xd0] sm:$0xff] }
  0x57   : > { %v255_v11 = vld [vmem:[%s1714_s1 + $0xd8] sm:$0xff]  ;;  %v257_v13 = vld [vmem:[%s1714_s1 + $0xe8] sm:$0xff]  ;;  %v258_v14 = vld [vmem:[%s1714_s1 + $0xf0] sm:$0xff] }
  0x58   : > { %1268 = vmatpush3.bf16.msra.mxu0 %v1265_v12  ;;  %1304 = vmatpush3.bf16.msra.mxu1 %v1301_v39  ;;  %v256_v12 = vld [vmem:[%s1714_s1 + $0xe0] sm:$0xff]  ;;  %v277_v17 = vld [vmem:[#allocation4 + $0x8] sm:$0xff]  ;;  %v278_v19 = vld [vmem:[#allocation4 + $0x10] sm:$0xff] }
  0x59   : > { %1270 = vmatprep.subr.bf16.mxu0 %v1269_v15  ;;  %1306 = vmatprep.subr.bf16.mxu1 %v1305_v44  ;;  %v276_v16 = vld [vmem:[#allocation4] sm:$0xff]  ;;  %v279_v20 = vld [vmem:[#allocation4 + $0x18] sm:$0xff]  ;;  %v281_v25 = vld [vmem:[#allocation4 + $0x28] sm:$0xff] }
  0x5a   : > { %v1317_v18 = vpack.c.bf16 %v277_v17, %v276_v16  ;;  %v1321_v23 = vpack.c.bf16 %v279_v20, %v278_v19  ;;  %v280_v24 = vld [vmem:[#allocation4 + $0x20] sm:$0xff]  ;;  %v283_v30 = vld [vmem:[#allocation4 + $0x38] sm:$0xff]  ;;  %v286_v39 = vld [vmem:[#allocation4 + $0x50] sm:$0xff] }
  0x5b   : > { %v1325_v28 = vpack.c.bf16 %v281_v25, %v280_v24  ;;  %v284_v34 = vld [vmem:[#allocation4 + $0x40] sm:$0xff]  ;;  %v287_v40 = vld [vmem:[#allocation4 + $0x58] sm:$0xff]  ;;  %v289_v45 = vld [vmem:[#allocation4 + $0x68] sm:$0xff] }
  0x5c   : > { %1272 = vmatpush3.bf16.msra.mxu0 %v1269_v15  ;;  %1308 = vmatpush3.bf16.msra.mxu1 %v1305_v44  ;;  %v259_v15 = vld [vmem:[%s1714_s1 + $0xf8] sm:$0xff]  ;;  %v288_v44 = vld [vmem:[#allocation4 + $0x60] sm:$0xff] }
  0x5d   : > { %1274 = vmatprep.subr.bf16.mxu0 %v1273_v21  ;;  %1310 = vmatprep.subr.bf16.mxu1 %v1309_v49  ;;  %v291_v50 = vld [vmem:[#allocation4 + $0x78] sm:$0xff] }
  0x60   : > { %1276 = vmatpush3.bf16.msra.mxu0 %v1273_v21  ;;  %1312 = vmatpush3.bf16.msra.mxu1 %v1309_v49  ;;  %v290_v49 = vld [vmem:[#allocation4 + $0x70] sm:$0xff] }
  0x61   : > { %1278 = vmatprep.subr.bf16.mxu0 %v1277_v29  ;;  %1314 = vmatprep.subr.bf16.mxu1 %v1313_v54 }
  0x64   : > { %1280 = vmatpush3.bf16.msra.mxu0 %v1277_v29  ;;  %1316 = vmatpush3.bf16.msra.mxu1 %v1313_v54  ;;  %v282_v29 = vld [vmem:[#allocation4 + $0x30] sm:$0xff] }
  0x65   : > { %1282 = vmatprep.subr.bf16.mxu0 %v1281_v35  ;;  %1318 = vmatprep.subr.bf16.mxu1 %v1317_v18  ;;  %v1329_v33 = vpack.c.bf16 %v283_v30, %v282_v29 }
  0x68   : > { %1284 = vmatpush3.bf16.msra.mxu0 %v1281_v35  ;;  %v285_v35 = vld [vmem:[#allocation4 + $0x48] sm:$0xff] }
  0x69   : > { %v1333_v38 = vpack.c.bf16 %v285_v35, %v284_v34 }
  0x6b   : > { %1094 = vmatmul.mubr.f32.vlgmr.msra.gmra.mrb[0].mxu0 %v229_v42 }
  0x6c   : > { %1096 = vmatprep.mubr.f32.mxu0 %v230_v43  ;;  %v1337_v43 = vpack.c.bf16 %v287_v40, %v286_v39 }
  0x6f   : > { %1097 = vmatmul.mubr.f32.gmra.mrb[2].mxu0 %v231_v47 }
  0x70   : > { %1099 = vmatprep.mubr.f32.mxu0 %v232_v48  ;;  %v1341_v48 = vpack.c.bf16 %v289_v45, %v288_v44 }
  0x73   : > { %1100 = vmatmul.mubr.f32.gmra.mrb[4].mxu0 %v233_v52 }
  0x74   : > { %1102 = vmatprep.mubr.f32.mxu0 %v234_v53  ;;  %v1345_v53 = vpack.c.bf16 %v291_v50, %v290_v49 }
  0x77   : > { %1103 = vmatmul.mubr.f32.gmra.mrb[6].mxu0 %v235_v55 }
  0x78   : > { %1105 = vmatprep.mubr.f32.mxu0 %v236_v56 }
  0x7b   : > { %1106 = vmatmul.mubr.f32.gmra.mrb[8].mxu0 %v237_v57 }
  0x7c   : > { %1108 = vmatprep.mubr.f32.mxu0 %v238_v58 }
  0x7f   : > { %1109 = vmatmul.mubr.f32.gmra.mrb[10].mxu0 %v239_v59 }
  0x80   : > { %1111 = vmatprep.mubr.f32.mxu0 %v240_v60 }
  0x83   : > { %1112 = vmatmul.mubr.f32.gmra.mrb[12].mxu0 %v241_v61 }
  0x84   : > { %1114 = vmatprep.mubr.f32.mxu0 %v242_v62 }
  0x87   : > { %1115 = vmatmul.mubr.f32.gmra.mrb[14].mxu0 %v243_v63 }
  0x88   : > { %1117 = vmatprep.mubr.f32.mxu0 %v244_v0 }
  0x8b   : > { %1118 = vmatmul.mubr.f32.gmra.mrb[16].mxu0 %v245_v1 }
  0x8c   : > { %1120 = vmatprep.mubr.f32.mxu0 %v246_v2 }
  0x8f   : > { %1121 = vmatmul.mubr.f32.gmra.mrb[18].mxu0 %v247_v3 }
  0x90   : > { %1123 = vmatprep.mubr.f32.mxu0 %v248_v4 }
  0x93   : > { %1124 = vmatmul.mubr.f32.gmra.mrb[20].mxu0 %v249_v5 }
  0x94   : > { %1126 = vmatprep.mubr.f32.mxu0 %v250_v6 }
  0x97   : > { %1127 = vmatmul.mubr.f32.gmra.mrb[22].mxu0 %v251_v7 }
  0x98   : > { %1129 = vmatprep.mubr.f32.mxu0 %v252_v8 }
  0x9b   : > { %1130 = vmatmul.mubr.f32.gmra.mrb[24].mxu0 %v253_v9 }
  0x9c   : > { %1132 = vmatprep.mubr.f32.mxu0 %v254_v10 }
  0x9f   : > { %1133 = vmatmul.mubr.f32.gmra.mrb[26].mxu0 %v255_v11 }
  0xa0   : > { %1135 = vmatprep.mubr.f32.mxu0 %v256_v12 }
  0xa3   : > { %1136 = vmatmul.mubr.f32.gmra.mrb[28].mxu0 %v257_v13 }
  0xa4   : > { %1138 = vmatprep.mubr.f32.mxu0 %v258_v14 }
  0xa7   : > { %1139 = vmatmul.mubr.f32.gmra.mrb[30].mxu0 %v259_v15 }
 0x13e   : > { %v1095_v21 = vpop.f32.mrb[0].mxu0 }
 0x13f   : > { %v374_v22 = vpop.f32.mrb[1].mxu0 }
 0x140   : > { %1173 = vmatprep.mubr.f32.mxu1 %v374_v22 }
 0x141   : > { %1174 = vmatmul.mubr.f32.vlgmr.msra.gmra.mrb[0].mxu1 %v1095_v21 }
 0x142   : > { %1320 = vmatpush3.bf16.msra.mxu1 %v1317_v18  ;;  %v1098_v26 = vpop.f32.mrb[2].mxu0 }
 0x143   : > { %v384_v27 = vpop.f32.mrb[3].mxu0  ;;  %1322 = vmatprep.subr.bf16.mxu1 %v1321_v23 }
 0x144   : > { %1176 = vmatprep.mubr.f32.mxu1 %v384_v27 }
 0x145   : > { %1177 = vmatmul.mubr.f32.gmra.mrb[2].mxu1 %v1098_v26 }
 0x146   : > { %1324 = vmatpush3.bf16.msra.mxu1 %v1321_v23  ;;  %v1101_v31 = vpop.f32.mrb[4].mxu0 }
 0x147   : > { %v394_v32 = vpop.f32.mrb[5].mxu0  ;;  %1326 = vmatprep.subr.bf16.mxu1 %v1325_v28 }
 0x148   : > { %1179 = vmatprep.mubr.f32.mxu1 %v394_v32 }
 0x149   : > { %1180 = vmatmul.mubr.f32.gmra.mrb[4].mxu1 %v1101_v31 }
 0x14a   : > { %1328 = vmatpush3.bf16.msra.mxu1 %v1325_v28  ;;  %v1104_v36 = vpop.f32.mrb[6].mxu0 }
 0x14b   : > { %v404_v37 = vpop.f32.mrb[7].mxu0  ;;  %1330 = vmatprep.subr.bf16.mxu1 %v1329_v33 }
 0x14c   : > { %1182 = vmatprep.mubr.f32.mxu1 %v404_v37 }
 0x14d   : > { %1183 = vmatmul.mubr.f32.gmra.mrb[6].mxu1 %v1104_v36 }
 0x14e   : > { %1332 = vmatpush3.bf16.msra.mxu1 %v1329_v33  ;;  %v1107_v41 = vpop.f32.mrb[8].mxu0 }
 0x14f   : > { %v414_v42 = vpop.f32.mrb[9].mxu0  ;;  %1334 = vmatprep.subr.bf16.mxu1 %v1333_v38 }
 0x150   : > { %1185 = vmatprep.mubr.f32.mxu1 %v414_v42 }
 0x151   : > { %1186 = vmatmul.mubr.f32.gmra.mrb[8].mxu1 %v1107_v41 }
 0x152   : > { %1336 = vmatpush3.bf16.msra.mxu1 %v1333_v38  ;;  %v1110_v46 = vpop.f32.mrb[10].mxu0 }
 0x153   : > { %v424_v47 = vpop.f32.mrb[11].mxu0  ;;  %1338 = vmatprep.subr.bf16.mxu1 %v1337_v43 }
 0x154   : > { %1188 = vmatprep.mubr.f32.mxu1 %v424_v47 }
 0x155   : > { %1189 = vmatmul.mubr.f32.gmra.mrb[10].mxu1 %v1110_v46 }
 0x156   : > { %1340 = vmatpush3.bf16.msra.mxu1 %v1337_v43  ;;  %v1113_v51 = vpop.f32.mrb[12].mxu0 }
 0x157   : > { %v434_v52 = vpop.f32.mrb[13].mxu0  ;;  %1342 = vmatprep.subr.bf16.mxu1 %v1341_v48 }
 0x158   : > { %1191 = vmatprep.mubr.f32.mxu1 %v434_v52 }
 0x159   : > { %1192 = vmatmul.mubr.f32.gmra.mrb[12].mxu1 %v1113_v51 }
 0x15a   : > { %1344 = vmatpush3.bf16.msra.mxu1 %v1341_v48  ;;  %v1116_v54 = vpop.f32.mrb[14].mxu0 }
 0x15b   : > { %v444_v55 = vpop.f32.mrb[15].mxu0  ;;  %1346 = vmatprep.subr.bf16.mxu1 %v1345_v53 }
 0x15c   : > { %1194 = vmatprep.mubr.f32.mxu1 %v444_v55 }
 0x15d   : > { %1195 = vmatmul.mubr.f32.gmra.mrb[14].mxu1 %v1116_v54 }
 0x15e   : > { %1348 = vmatpush3.bf16.msra.mxu1 %v1345_v53  ;;  %v1119_v56 = vpop.f32.mrb[16].mxu0 }
 0x15f   : > { %v454_v57 = vpop.f32.mrb[17].mxu0 }
 0x160   : > { %1229 = vmatprep.mubr.f32.mxu1 %v454_v57 }
 0x161   : > { %1230 = vmatmul.mubr.f32.vlgmr.msra.gmra.mrb[16].mxu1 %v1119_v56 }
 0x162   : > { %v1122_v58 = vpop.f32.mrb[18].mxu0 }
 0x163   : > { %v464_v59 = vpop.f32.mrb[19].mxu0 }
 0x164   : > { %1232 = vmatprep.mubr.f32.mxu1 %v464_v59 }
 0x165   : > { %1233 = vmatmul.mubr.f32.gmra.mrb[18].mxu1 %v1122_v58 }
 0x166   : > { %v1125_v60 = vpop.f32.mrb[20].mxu0 }
 0x167   : > { %v474_v61 = vpop.f32.mrb[21].mxu0 }
 0x168   : > { %1235 = vmatprep.mubr.f32.mxu1 %v474_v61 }
 0x169   : > { %1236 = vmatmul.mubr.f32.gmra.mrb[20].mxu1 %v1125_v60 }
 0x16a   : > { %v1128_v62 = vpop.f32.mrb[22].mxu0 }
 0x16b   : > { %v484_v63 = vpop.f32.mrb[23].mxu0 }
 0x16c   : > { %1238 = vmatprep.mubr.f32.mxu1 %v484_v63 }
 0x16d   : > { %1239 = vmatmul.mubr.f32.gmra.mrb[22].mxu1 %v1128_v62 }
 0x16e   : > { %v1131_v0 = vpop.f32.mrb[24].mxu0 }
 0x16f   : > { %v494_v1 = vpop.f32.mrb[25].mxu0 }
 0x170   : > { %1241 = vmatprep.mubr.f32.mxu1 %v494_v1 }
 0x171   : > { %1242 = vmatmul.mubr.f32.gmra.mrb[24].mxu1 %v1131_v0 }
 0x172   : > { %v1134_v2 = vpop.f32.mrb[26].mxu0 }
 0x173   : > { %v504_v3 = vpop.f32.mrb[27].mxu0 }
 0x174   : > { %1244 = vmatprep.mubr.f32.mxu1 %v504_v3 }
 0x175   : > { %1245 = vmatmul.mubr.f32.gmra.mrb[26].mxu1 %v1134_v2 }
 0x176   : > { %v1137_v4 = vpop.f32.mrb[28].mxu0 }
 0x177   : > { %v514_v5 = vpop.f32.mrb[29].mxu0 }
 0x178   : > { %1247 = vmatprep.mubr.f32.mxu1 %v514_v5 }
 0x179   : > { %1248 = vmatmul.mubr.f32.gmra.mrb[28].mxu1 %v1137_v4 }
 0x17a   : > { %v1140_v6 = vpop.f32.mrb[30].mxu0 }
 0x17b   : > { %v524_v7 = vpop.f32.mrb[31].mxu0 }
 0x17c   : > { %1250 = vmatprep.mubr.f32.mxu1 %v524_v7 }
 0x17d   : > { %1251 = vmatmul.mubr.f32.gmra.mrb[30].mxu1 %v1140_v6 }
 0x214   : > { %v1175_v8 = vpop.f32.mrb[0].mxu1 }
 0x215   : > { %v599_v9 = vpop.f32.mrb[1].mxu1 }
 0x218   : > { %v1178_v10 = vpop.f32.mrb[2].mxu1 }
 0x219   : > { %v609_v11 = vpop.f32.mrb[3].mxu1 }
 0x21c   : > { %v1181_v12 = vpop.f32.mrb[4].mxu1 }
 0x21d   : > { %v619_v13 = vpop.f32.mrb[5].mxu1 }
 0x220   : > { %v1184_v14 = vpop.f32.mrb[6].mxu1 }
 0x221   : > { %v629_v15 = vpop.f32.mrb[7].mxu1 }
 0x224   : > { %v1187_v16 = vpop.f32.mrb[8].mxu1 }
 0x225   : > { %v639_v17 = vpop.f32.mrb[9].mxu1 }
 0x228   : > { %v1190_v18 = vpop.f32.mrb[10].mxu1 }
 0x229   : > { %v649_v19 = vpop.f32.mrb[11].mxu1 }
 0x22c   : > { %v1193_v20 = vpop.f32.mrb[12].mxu1 }
 0x22d   : > { %v659_v21 = vpop.f32.mrb[13].mxu1 }
 0x230   : > { %v1196_v22 = vpop.f32.mrb[14].mxu1 }
 0x231   : > { %v669_v23 = vpop.f32.mrb[15].mxu1 }
 0x234   : > { %v1231_v24 = vpop.f32.mrb[16].mxu1 }
 0x235   : > { %v824_v25 = vsub.f32 %v1175_v8, %v1231_v24  ;;  %v744_v26 = vpop.f32.mrb[17].mxu1 }
 0x236   : > { %v823_v27 = vsub.f32 %v599_v9, %v744_v26 }
 0x237   : > { %840 = vst [vmem:[%s1692_s21 + $0x8] sm:$0xff] %v824_v25 }
 0x238   : > { %839 = vst [vmem:[%s1692_s21] sm:$0xff] %v823_v27  ;;  %v1234_v28 = vpop.f32.mrb[18].mxu1 }
 0x239   : > { %v826_v29 = vsub.f32 %v1178_v10, %v1234_v28  ;;  %v754_v30 = vpop.f32.mrb[19].mxu1 }
 0x23a   : > { %v825_v31 = vsub.f32 %v609_v11, %v754_v30 }
 0x23b   : > { %842 = vst [vmem:[%s1692_s21 + $0x18] sm:$0xff] %v826_v29 }
 0x23c   : > { %841 = vst [vmem:[%s1692_s21 + $0x10] sm:$0xff] %v825_v31  ;;  %v1237_v32 = vpop.f32.mrb[20].mxu1 }
 0x23d   : > { %v828_v33 = vsub.f32 %v1181_v12, %v1237_v32  ;;  %v764_v34 = vpop.f32.mrb[21].mxu1 }
 0x23e   : > { %v827_v35 = vsub.f32 %v619_v13, %v764_v34 }
 0x23f   : > { %844 = vst [vmem:[%s1692_s21 + $0x28] sm:$0xff] %v828_v33 }
 0x240   : > { %843 = vst [vmem:[%s1692_s21 + $0x20] sm:$0xff] %v827_v35  ;;  %v1240_v36 = vpop.f32.mrb[22].mxu1 }
 0x241   : > { %v830_v37 = vsub.f32 %v1184_v14, %v1240_v36  ;;  %v774_v38 = vpop.f32.mrb[23].mxu1 }
 0x242   : > { %v829_v39 = vsub.f32 %v629_v15, %v774_v38 }
 0x243   : > { %846 = vst [vmem:[%s1692_s21 + $0x38] sm:$0xff] %v830_v37 }
 0x244   : > { %845 = vst [vmem:[%s1692_s21 + $0x30] sm:$0xff] %v829_v39  ;;  %v1243_v40 = vpop.f32.mrb[24].mxu1 }
 0x245   : > { %v832_v41 = vsub.f32 %v1187_v16, %v1243_v40  ;;  %v784_v42 = vpop.f32.mrb[25].mxu1 }
 0x246   : > { %v831_v43 = vsub.f32 %v639_v17, %v784_v42 }
 0x247   : > { %848 = vst [vmem:[%s1692_s21 + $0x48] sm:$0xff] %v832_v41 }
 0x248   : > { %847 = vst [vmem:[%s1692_s21 + $0x40] sm:$0xff] %v831_v43  ;;  %v1246_v44 = vpop.f32.mrb[26].mxu1 }
 0x249   : > { %v834_v45 = vsub.f32 %v1190_v18, %v1246_v44  ;;  %v794_v46 = vpop.f32.mrb[27].mxu1 }
 0x24a   : > { %v833_v47 = vsub.f32 %v649_v19, %v794_v46 }
 0x24b   : > { %850 = vst [vmem:[%s1692_s21 + $0x58] sm:$0xff] %v834_v45 }
 0x24c   : > { %849 = vst [vmem:[%s1692_s21 + $0x50] sm:$0xff] %v833_v47  ;;  %v1249_v48 = vpop.f32.mrb[28].mxu1 }
 0x24d   : > { %v836_v49 = vsub.f32 %v1193_v20, %v1249_v48  ;;  %v804_v50 = vpop.f32.mrb[29].mxu1 }
 0x24e   : > { %v835_v51 = vsub.f32 %v659_v21, %v804_v50 }
 0x24f   : > { %852 = vst [vmem:[%s1692_s21 + $0x68] sm:$0xff] %v836_v49 }
 0x250   : > { %851 = vst [vmem:[%s1692_s21 + $0x60] sm:$0xff] %v835_v51  ;;  %v1252_v52 = vpop.f32.mrb[30].mxu1 }
 0x251   : > { %v838_v53 = vsub.f32 %v1196_v22, %v1252_v52  ;;  %v814_v54 = vpop.f32.mrb[31].mxu1 }
 0x252   : > { %v837_v55 = vsub.f32 %v669_v23, %v814_v54 }
 0x253   : > { %854 = vst [vmem:[%s1692_s21 + $0x78] sm:$0xff] %v838_v53 }
 0x254   : > { %853 = vst [vmem:[%s1692_s21 + $0x70] sm:$0xff] %v837_v55 }
 0x255 PF: > { %s16_s15 = sadd.s32 1, %s1450_s15  }
 0x256   : > { %p13_p5 = scmp.ge.s32.totalorder %s16_s15, 4  }
 0x258   :  { %15 = sbr.rel (!%p13_p5) target bundleno = 2 (0x2), region = 75 }
 0x25f   :  { %876 = vsyncpa [#allocation3], 1 }
 0x260   :  { %878 = vsyncpa [#allocation3 + $0x1], 1 }
 0x261   :  { %879 = vsyncpa [#allocation5], 1 }

</bundles_post_ra>
